<compile_context>
chip_gen: v7x
topology: tpu7x:2x2x1
jax: 0.10.0
libtpu: 0.0.40
codegen_flags: <defaults>
</compile_context>

<pallas_src>
import math

import jax
import jax.numpy as jnp
from jax.experimental import pallas as pl
from jax.experimental.pallas import tpu as pltpu


def _make_transformer_layer_kernel(L, c, num_heads):
    """Per-batch-element kernel; static shapes closed over."""
    d = c // num_heads
    scale = 1.0 / math.sqrt(d)

    def kernel(x_ref, wqkv_ref, bqkv_ref, wo_ref, bo_ref, wff_ref, o_ref):
        # x_ref:    (1, L, c)   one batch element, seq-major
        # wqkv_ref: (c, 3c)     folded (in_proj @ {Wq,Wk,Wv})^T, concatenated
        # bqkv_ref: (1, 3c)     in_proj bias
        # wo_ref:   (c, c)      out_proj weight^T
        # bo_ref:   (1, c)      out_proj bias
        # wff_ref:  (c, c)      (W_fc2 @ W_fc1)^T
        # o_ref:    (1, L, c)
        x = x_ref[0]                                               # (L, c) f32

        # --- fused Q/K/V projection: one MXU matmul, K = c, N = 3c -----------
        qkv = jnp.dot(x, wqkv_ref[...],
                      preferred_element_type=jnp.float32) + bqkv_ref[...]
        q = qkv[:, :c] * scale                                     # scale as in PyTorch MHA
        k = qkv[:, c:2 * c]
        v = qkv[:, 2 * c:]

        # --- multi-head scaled-dot-product attention (static head unroll) ----
        head_outs = []
        for h in range(num_heads):
            sl = slice(h * d, (h + 1) * d)
            qh, kh, vh = q[:, sl], k[:, sl], v[:, sl]              # (L, d) each
            s = jnp.einsum('ld,md->lm', qh, kh,
                           preferred_element_type=jnp.float32)     # (L, L)
            s = s - jnp.max(s, axis=-1, keepdims=True)
            e = jnp.exp(s)
            p = e * pl.reciprocal(jnp.sum(e, axis=-1, keepdims=True),
                                  approx=False)
            head_outs.append(jnp.dot(p, vh,
                                     preferred_element_type=jnp.float32))
        a = jnp.concatenate(head_outs, axis=-1)                    # (L, c)

        # --- output projection + residual ------------------------------------
        attn = jnp.dot(a, wo_ref[...],
                       preferred_element_type=jnp.float32) + bo_ref[...]
        x1 = x + attn

        # --- FFN (fc2 @ fc1 folded into one matmul) + residual ---------------
        x2 = x1 + jnp.dot(x1, wff_ref[...],
                          preferred_element_type=jnp.float32)

        o_ref[0] = x2.astype(o_ref.dtype)

    return kernel


def transformer_layer(x, wq, wk, wv, in_w, in_b, out_w, out_b, w_fc1, w_fc2,
                      *, num_heads):
    """Pallas implementation of TransformerLayer.forward.

    x:      (L, N, c) float32  (seq, batch, channels) -- PyTorch MHA layout
    wq/wk/wv:   (c, c)         Linear weights (bias=False)
    in_w:   (3c, c), in_b: (3c,)   MultiheadAttention in_proj
    out_w:  (c, c),  out_b: (c,)   MultiheadAttention out_proj
    w_fc1, w_fc2: (c, c)       Linear weights (bias=False)
    returns (L, N, c) float32
    """
    L, N, c = x.shape
    assert c % num_heads == 0

    # --- wrapper-side weight folding (no per-call compute inside the kernel) --
    wiq, wik, wiv = in_w[:c], in_w[c:2 * c], in_w[2 * c:]
    wqkv = jnp.concatenate(
        [(wiq @ wq).T, (wik @ wk).T, (wiv @ wv).T], axis=1)        # (c, 3c)
    bqkv = in_b.reshape(1, 3 * c)
    wo = out_w.T                                                   # (c, c)
    bo = out_b.reshape(1, c)
    wff = (w_fc2 @ w_fc1).T                                        # (c, c)

    x_nlc = jnp.transpose(x, (1, 0, 2))                            # (N, L, c)

    kernel = _make_transformer_layer_kernel(L, c, num_heads)

    flops_per_batch = (2 * L * c * (3 * c)        # fused QKV projection
                       + 4 * L * L * c            # scores + attn@V (all heads)
                       + 2 * L * c * c            # out projection
                       + 2 * L * c * c)           # folded FFN
    bytes_accessed = 4 * (2 * x.size + wqkv.size + bqkv.size
                          + wo.size + bo.size + wff.size)
    cost = pl.CostEstimate(flops=N * flops_per_batch,
                           transcendentals=N * num_heads * L * L,
                           bytes_accessed=bytes_accessed)

    out_nlc = pl.pallas_call(
        kernel,
        out_shape=jax.ShapeDtypeStruct((N, L, c), jnp.float32),
        grid_spec=pltpu.PrefetchScalarGridSpec(
            num_scalar_prefetch=0,
            grid=(N,),
            in_specs=[
                pl.BlockSpec((1, L, c), lambda n: (n, 0, 0)),
                pl.BlockSpec((c, 3 * c), lambda n: (0, 0)),
                pl.BlockSpec((1, 3 * c), lambda n: (0, 0)),
                pl.BlockSpec((c, c), lambda n: (0, 0)),
                pl.BlockSpec((1, c), lambda n: (0, 0)),
                pl.BlockSpec((c, c), lambda n: (0, 0)),
            ],
            out_specs=pl.BlockSpec((1, L, c), lambda n: (n, 0, 0)),
        ),
        compiler_params=pltpu.CompilerParams(
            dimension_semantics=("parallel",)),
        cost_estimate=cost,
    )(x_nlc, wqkv, bqkv, wo, bo, wff)

    return jnp.transpose(out_nlc, (1, 0, 2))                       # back to (L, N, c)


def _reference(x, wq, wk, wv, in_w, in_b, out_w, out_b, w_fc1, w_fc2, num_heads):
    """Pure-JAX reference replicating PyTorch TransformerLayer semantics."""
    L, N, c = x.shape
    d = c // num_heads
    q = x @ wq.T
    k = x @ wk.T
    v = x @ wv.T
    q = q @ in_w[:c].T + in_b[:c]
    k = k @ in_w[c:2 * c].T + in_b[c:2 * c]
    v = v @ in_w[2 * c:].T + in_b[2 * c:]
    q = q.reshape(L, N * num_heads, d).transpose(1, 0, 2) * (1.0 / math.sqrt(d))
    k = k.reshape(L, N * num_heads, d).transpose(1, 0, 2)
    v = v.reshape(L, N * num_heads, d).transpose(1, 0, 2)
    p = jax.nn.softmax(q @ k.transpose(0, 2, 1), axis=-1)
    a = (p @ v).transpose(1, 0, 2).reshape(L, N, c)
    a = a @ out_w.T + out_b
    x = a + x
    x = (x @ w_fc1.T) @ w_fc2.T + x
    return x


if __name__ == "__main__":
    # TransformerLayer(c=32, num_heads=4), x: (seq=8, batch=2, c=32)
    L, N, c, num_heads = 8, 2, 32, 4

    key = jax.random.PRNGKey(0)
    keys = jax.random.split(key, 10)
    s = 1.0 / math.sqrt(c)

    x = jax.random.normal(keys[0], (L, N, c), dtype=jnp.float32)
    wq = jax.random.normal(keys[1], (c, c), dtype=jnp.float32) * s
    wk = jax.random.normal(keys[2], (c, c), dtype=jnp.float32) * s
    wv = jax.random.normal(keys[3], (c, c), dtype=jnp.float32) * s
    in_w = jax.random.normal(keys[4], (3 * c, c), dtype=jnp.float32) * s
    in_b = jax.random.normal(keys[5], (3 * c,), dtype=jnp.float32) * 0.1
    out_w = jax.random.normal(keys[6], (c, c), dtype=jnp.float32) * s
    out_b = jax.random.normal(keys[7], (c,), dtype=jnp.float32) * 0.1
    w_fc1 = jax.random.normal(keys[8], (c, c), dtype=jnp.float32) * s
    w_fc2 = jax.random.normal(keys[9], (c, c), dtype=jnp.float32) * s

    out = transformer_layer(x, wq, wk, wv, in_w, in_b, out_w, out_b,
                            w_fc1, w_fc2, num_heads=num_heads)
    out = jax.block_until_ready(out)

    ref = _reference(x, wq, wk, wv, in_w, in_b, out_w, out_b,
                     w_fc1, w_fc2, num_heads)
    assert out.shape == (L, N, c)
    assert jnp.allclose(out, ref, atol=2e-4, rtol=2e-4), \
        float(jnp.max(jnp.abs(out - ref)))
    # TODO(synk): at production sizes, pad c to a 128/256-lane multiple (with
    # head masking) and cast matmul operands to bf16 for full MXU rate.
    print("KERNEL_OK")
</pallas_src>

<mosaic_0001>
module attributes {stable_mosaic.version = 11 : i64} {
  func.func @kernel(%arg0: i32, %arg1: memref<1x8x32xf32, #tpu.memory_space<vmem>>, %arg2: memref<32x96xf32, #tpu.memory_space<vmem>>, %arg3: memref<1x96xf32, #tpu.memory_space<vmem>>, %arg4: memref<32x32xf32, #tpu.memory_space<vmem>>, %arg5: memref<1x32xf32, #tpu.memory_space<vmem>>, %arg6: memref<32x32xf32, #tpu.memory_space<vmem>>, %arg7: memref<1x8x32xf32, #tpu.memory_space<vmem>>) attributes {dimension_semantics = [#tpu.dimension_semantics<parallel>], iteration_bounds = array<i64: 2>, scalar_prefetch = 0 : i64, scratch_operands = 0 : i64, tpu.core_type = #tpu.core_type<tc>, window_params = [{transform_indices = @transform_0, window_bounds = array<i64: 1, 8, 32>}, {pipeline_mode = #tpu.pipeline_mode<synchronous>, transform_indices = @transform_1, window_bounds = array<i64: 32, 96>}, {pipeline_mode = #tpu.pipeline_mode<synchronous>, transform_indices = @transform_2, window_bounds = array<i64: 1, 96>}, {pipeline_mode = #tpu.pipeline_mode<synchronous>, transform_indices = @transform_3, window_bounds = array<i64: 32, 32>}, {pipeline_mode = #tpu.pipeline_mode<synchronous>, transform_indices = @transform_4, window_bounds = array<i64: 1, 32>}, {pipeline_mode = #tpu.pipeline_mode<synchronous>, transform_indices = @transform_5, window_bounds = array<i64: 32, 32>}, {transform_indices = @transform_6, window_bounds = array<i64: 1, 8, 32>}]} {
    %c0 = arith.constant 0 : index
    %c0_0 = arith.constant 0 : index
    %c0_1 = arith.constant 0 : index
    %0 = vector.load %arg1[%c0, %c0_0, %c0_1] : memref<1x8x32xf32, #tpu.memory_space<vmem>>, vector<1x8x32xf32>
    %1 = vector.shape_cast %0 : vector<1x8x32xf32> to vector<8x32xf32>
    %c0_2 = arith.constant 0 : index
    %c0_3 = arith.constant 0 : index
    %2 = vector.load %arg2[%c0_2, %c0_3] : memref<32x96xf32, #tpu.memory_space<vmem>>, vector<32x96xf32>
    %cst = arith.constant dense<0.000000e+00> : vector<8x96xf32>
    %3 = tpu.matmul %1, %2, %cst {dimension_numbers = #tpu.dot_dimension_numbers<[1], [0], [0], [1], [0, 0, 1, 1], [], []>} : vector<8x32xf32>, vector<32x96xf32>, vector<8x96xf32> -> vector<8x96xf32>
    %c0_4 = arith.constant 0 : index
    %c0_5 = arith.constant 0 : index
    %4 = vector.load %arg3[%c0_4, %c0_5] : memref<1x96xf32, #tpu.memory_space<vmem>>, vector<1x96xf32>
    %5 = vector.broadcast %4 : vector<1x96xf32> to vector<8x96xf32>
    %6 = arith.addf %3, %5 : vector<8x96xf32>
    %7 = vector.extract_strided_slice %6 {offsets = [0, 0], sizes = [8, 32], strides = [1, 1]} : vector<8x96xf32> to vector<8x32xf32>
    %cst_6 = arith.constant 0.353553385 : f32
    %8 = vector.broadcast %cst_6 : f32 to vector<8x32xf32>
    %9 = arith.mulf %7, %8 : vector<8x32xf32>
    %10 = vector.extract_strided_slice %6 {offsets = [0, 32], sizes = [8, 32], strides = [1, 1]} : vector<8x96xf32> to vector<8x32xf32>
    %11 = vector.extract_strided_slice %6 {offsets = [0, 64], sizes = [8, 32], strides = [1, 1]} : vector<8x96xf32> to vector<8x32xf32>
    %12 = vector.extract_strided_slice %9 {offsets = [0, 0], sizes = [8, 8], strides = [1, 1]} : vector<8x32xf32> to vector<8x8xf32>
    %13 = vector.extract_strided_slice %10 {offsets = [0, 0], sizes = [8, 8], strides = [1, 1]} : vector<8x32xf32> to vector<8x8xf32>
    %14 = vector.extract_strided_slice %11 {offsets = [0, 0], sizes = [8, 8], strides = [1, 1]} : vector<8x32xf32> to vector<8x8xf32>
    "tpu.trace_start"() <{level = 10 : i32, message = "ld,md->lm"}> : () -> ()
    %cst_7 = arith.constant dense<0.000000e+00> : vector<8x8xf32>
    %15 = tpu.matmul %12, %13, %cst_7 {dimension_numbers = #tpu.dot_dimension_numbers<[1], [1], [0], [0], [0, 0, 1, 0], [], []>} : vector<8x8xf32>, vector<8x8xf32>, vector<8x8xf32> -> vector<8x8xf32>
    "tpu.trace_stop"() : () -> ()
    %cst_8 = arith.constant dense<0xFF800000> : vector<8xf32>
    %16 = vector.multi_reduction <maximumf>, %15, %cst_8 [1] : vector<8x8xf32> to vector<8xf32>
    %17 = vector.shape_cast %16 : vector<8xf32> to vector<8x1xf32>
    %18 = vector.broadcast %17 : vector<8x1xf32> to vector<8x8xf32>
    %19 = arith.subf %15, %18 : vector<8x8xf32>
    %20 = math.exp %19 : vector<8x8xf32>
    %cst_9 = arith.constant dense<0.000000e+00> : vector<8xf32>
    %21 = vector.multi_reduction <add>, %20, %cst_9 [1] : vector<8x8xf32> to vector<8xf32>
    %22 = vector.shape_cast %21 : vector<8xf32> to vector<8x1xf32>
    %23 = tpu.reciprocal %22 : vector<8x1xf32> -> vector<8x1xf32>
    %24 = vector.broadcast %23 : vector<8x1xf32> to vector<8x8xf32>
    %25 = arith.mulf %20, %24 : vector<8x8xf32>
    %cst_10 = arith.constant dense<0.000000e+00> : vector<8x8xf32>
    %26 = tpu.matmul %25, %14, %cst_10 {dimension_numbers = #tpu.dot_dimension_numbers<[1], [0], [0], [1], [0, 0, 1, 1], [], []>} : vector<8x8xf32>, vector<8x8xf32>, vector<8x8xf32> -> vector<8x8xf32>
    %27 = vector.extract_strided_slice %9 {offsets = [0, 8], sizes = [8, 8], strides = [1, 1]} : vector<8x32xf32> to vector<8x8xf32>
    %28 = vector.extract_strided_slice %10 {offsets = [0, 8], sizes = [8, 8], strides = [1, 1]} : vector<8x32xf32> to vector<8x8xf32>
    %29 = vector.extract_strided_slice %11 {offsets = [0, 8], sizes = [8, 8], strides = [1, 1]} : vector<8x32xf32> to vector<8x8xf32>
    "tpu.trace_start"() <{level = 10 : i32, message = "ld,md->lm"}> : () -> ()
    %cst_11 = arith.constant dense<0.000000e+00> : vector<8x8xf32>
    %30 = tpu.matmul %27, %28, %cst_11 {dimension_numbers = #tpu.dot_dimension_numbers<[1], [1], [0], [0], [0, 0, 1, 0], [], []>} : vector<8x8xf32>, vector<8x8xf32>, vector<8x8xf32> -> vector<8x8xf32>
    "tpu.trace_stop"() : () -> ()
    %cst_12 = arith.constant dense<0xFF800000> : vector<8xf32>
    %31 = vector.multi_reduction <maximumf>, %30, %cst_12 [1] : vector<8x8xf32> to vector<8xf32>
    %32 = vector.shape_cast %31 : vector<8xf32> to vector<8x1xf32>
    %33 = vector.broadcast %32 : vector<8x1xf32> to vector<8x8xf32>
    %34 = arith.subf %30, %33 : vector<8x8xf32>
    %35 = math.exp %34 : vector<8x8xf32>
    %cst_13 = arith.constant dense<0.000000e+00> : vector<8xf32>
    %36 = vector.multi_reduction <add>, %35, %cst_13 [1] : vector<8x8xf32> to vector<8xf32>
    %37 = vector.shape_cast %36 : vector<8xf32> to vector<8x1xf32>
    %38 = tpu.reciprocal %37 : vector<8x1xf32> -> vector<8x1xf32>
    %39 = vector.broadcast %38 : vector<8x1xf32> to vector<8x8xf32>
    %40 = arith.mulf %35, %39 : vector<8x8xf32>
    %cst_14 = arith.constant dense<0.000000e+00> : vector<8x8xf32>
    %41 = tpu.matmul %40, %29, %cst_14 {dimension_numbers = #tpu.dot_dimension_numbers<[1], [0], [0], [1], [0, 0, 1, 1], [], []>} : vector<8x8xf32>, vector<8x8xf32>, vector<8x8xf32> -> vector<8x8xf32>
    %42 = vector.extract_strided_slice %9 {offsets = [0, 16], sizes = [8, 8], strides = [1, 1]} : vector<8x32xf32> to vector<8x8xf32>
    %43 = vector.extract_strided_slice %10 {offsets = [0, 16], sizes = [8, 8], strides = [1, 1]} : vector<8x32xf32> to vector<8x8xf32>
    %44 = vector.extract_strided_slice %11 {offsets = [0, 16], sizes = [8, 8], strides = [1, 1]} : vector<8x32xf32> to vector<8x8xf32>
    "tpu.trace_start"() <{level = 10 : i32, message = "ld,md->lm"}> : () -> ()
    %cst_15 = arith.constant dense<0.000000e+00> : vector<8x8xf32>
    %45 = tpu.matmul %42, %43, %cst_15 {dimension_numbers = #tpu.dot_dimension_numbers<[1], [1], [0], [0], [0, 0, 1, 0], [], []>} : vector<8x8xf32>, vector<8x8xf32>, vector<8x8xf32> -> vector<8x8xf32>
    "tpu.trace_stop"() : () -> ()
    %cst_16 = arith.constant dense<0xFF800000> : vector<8xf32>
    %46 = vector.multi_reduction <maximumf>, %45, %cst_16 [1] : vector<8x8xf32> to vector<8xf32>
    %47 = vector.shape_cast %46 : vector<8xf32> to vector<8x1xf32>
    %48 = vector.broadcast %47 : vector<8x1xf32> to vector<8x8xf32>
    %49 = arith.subf %45, %48 : vector<8x8xf32>
    %50 = math.exp %49 : vector<8x8xf32>
    %cst_17 = arith.constant dense<0.000000e+00> : vector<8xf32>
    %51 = vector.multi_reduction <add>, %50, %cst_17 [1] : vector<8x8xf32> to vector<8xf32>
    %52 = vector.shape_cast %51 : vector<8xf32> to vector<8x1xf32>
    %53 = tpu.reciprocal %52 : vector<8x1xf32> -> vector<8x1xf32>
    %54 = vector.broadcast %53 : vector<8x1xf32> to vector<8x8xf32>
    %55 = arith.mulf %50, %54 : vector<8x8xf32>
    %cst_18 = arith.constant dense<0.000000e+00> : vector<8x8xf32>
    %56 = tpu.matmul %55, %44, %cst_18 {dimension_numbers = #tpu.dot_dimension_numbers<[1], [0], [0], [1], [0, 0, 1, 1], [], []>} : vector<8x8xf32>, vector<8x8xf32>, vector<8x8xf32> -> vector<8x8xf32>
    %57 = vector.extract_strided_slice %9 {offsets = [0, 24], sizes = [8, 8], strides = [1, 1]} : vector<8x32xf32> to vector<8x8xf32>
    %58 = vector.extract_strided_slice %10 {offsets = [0, 24], sizes = [8, 8], strides = [1, 1]} : vector<8x32xf32> to vector<8x8xf32>
    %59 = vector.extract_strided_slice %11 {offsets = [0, 24], sizes = [8, 8], strides = [1, 1]} : vector<8x32xf32> to vector<8x8xf32>
    "tpu.trace_start"() <{level = 10 : i32, message = "ld,md->lm"}> : () -> ()
    %cst_19 = arith.constant dense<0.000000e+00> : vector<8x8xf32>
    %60 = tpu.matmul %57, %58, %cst_19 {dimension_numbers = #tpu.dot_dimension_numbers<[1], [1], [0], [0], [0, 0, 1, 0], [], []>} : vector<8x8xf32>, vector<8x8xf32>, vector<8x8xf32> -> vector<8x8xf32>
    "tpu.trace_stop"() : () -> ()
    %cst_20 = arith.constant dense<0xFF800000> : vector<8xf32>
    %61 = vector.multi_reduction <maximumf>, %60, %cst_20 [1] : vector<8x8xf32> to vector<8xf32>
    %62 = vector.shape_cast %61 : vector<8xf32> to vector<8x1xf32>
    %63 = vector.broadcast %62 : vector<8x1xf32> to vector<8x8xf32>
    %64 = arith.subf %60, %63 : vector<8x8xf32>
    %65 = math.exp %64 : vector<8x8xf32>
    %cst_21 = arith.constant dense<0.000000e+00> : vector<8xf32>
    %66 = vector.multi_reduction <add>, %65, %cst_21 [1] : vector<8x8xf32> to vector<8xf32>
    %67 = vector.shape_cast %66 : vector<8xf32> to vector<8x1xf32>
    %68 = tpu.reciprocal %67 : vector<8x1xf32> -> vector<8x1xf32>
    %69 = vector.broadcast %68 : vector<8x1xf32> to vector<8x8xf32>
    %70 = arith.mulf %65, %69 : vector<8x8xf32>
    %cst_22 = arith.constant dense<0.000000e+00> : vector<8x8xf32>
    %71 = tpu.matmul %70, %59, %cst_22 {dimension_numbers = #tpu.dot_dimension_numbers<[1], [0], [0], [1], [0, 0, 1, 1], [], []>} : vector<8x8xf32>, vector<8x8xf32>, vector<8x8xf32> -> vector<8x8xf32>
    %72 = tpu.concatenate %26, %41, %56, %71 in 1 : vector<8x8xf32>, vector<8x8xf32>, vector<8x8xf32>, vector<8x8xf32> -> vector<8x32xf32>
    %c0_23 = arith.constant 0 : index
    %c0_24 = arith.constant 0 : index
    %73 = vector.load %arg4[%c0_23, %c0_24] : memref<32x32xf32, #tpu.memory_space<vmem>>, vector<32x32xf32>
    %cst_25 = arith.constant dense<0.000000e+00> : vector<8x32xf32>
    %74 = tpu.matmul %72, %73, %cst_25 {dimension_numbers = #tpu.dot_dimension_numbers<[1], [0], [0], [1], [0, 0, 1, 1], [], []>} : vector<8x32xf32>, vector<32x32xf32>, vector<8x32xf32> -> vector<8x32xf32>
    %c0_26 = arith.constant 0 : index
    %c0_27 = arith.constant 0 : index
    %75 = vector.load %arg5[%c0_26, %c0_27] : memref<1x32xf32, #tpu.memory_space<vmem>>, vector<1x32xf32>
    %76 = vector.broadcast %75 : vector<1x32xf32> to vector<8x32xf32>
    %77 = arith.addf %74, %76 : vector<8x32xf32>
    %78 = arith.addf %1, %77 : vector<8x32xf32>
    %c0_28 = arith.constant 0 : index
    %c0_29 = arith.constant 0 : index
    %79 = vector.load %arg6[%c0_28, %c0_29] : memref<32x32xf32, #tpu.memory_space<vmem>>, vector<32x32xf32>
    %cst_30 = arith.constant dense<0.000000e+00> : vector<8x32xf32>
    %80 = tpu.matmul %78, %79, %cst_30 {dimension_numbers = #tpu.dot_dimension_numbers<[1], [0], [0], [1], [0, 0, 1, 1], [], []>} : vector<8x32xf32>, vector<32x32xf32>, vector<8x32xf32> -> vector<8x32xf32>
    %81 = arith.addf %78, %80 : vector<8x32xf32>
    %c0_31 = arith.constant 0 : index
    %c0_32 = arith.constant 0 : index
    %c0_33 = arith.constant 0 : index
    %82 = vector.load %arg7[%c0_31, %c0_32, %c0_33] : memref<1x8x32xf32, #tpu.memory_space<vmem>>, vector<1x8x32xf32>
    %83 = vector.shape_cast %82 : vector<1x8x32xf32> to vector<8x32xf32>
    %84 = vector.shape_cast %81 : vector<8x32xf32> to vector<1x8x32xf32>
    tpu.vector_store %arg7[%c0_31, %c0_32, %c0_33], %84 {strides = array<i32>} : memref<1x8x32xf32, #tpu.memory_space<vmem>>, vector<1x8x32xf32>,
    return
  }
  func.func @transform_0(%arg0: i32) -> (i32, i32, i32) {
    %c0_i32 = arith.constant 0 : i32
    %c0_i32_0 = arith.constant 0 : i32
    %c0_i32_1 = arith.constant 0 : i32
    return %arg0, %c0_i32, %c0_i32_0 : i32, i32, i32
  }
  func.func @transform_1(%arg0: i32) -> (i32, i32) {
    %c0_i32 = arith.constant 0 : i32
    %c0_i32_0 = arith.constant 0 : i32
    %c0_i32_1 = arith.constant 0 : i32
    return %c0_i32, %c0_i32_0 : i32, i32
  }
  func.func @transform_2(%arg0: i32) -> (i32, i32) {
    %c0_i32 = arith.constant 0 : i32
    %c0_i32_0 = arith.constant 0 : i32
    %c0_i32_1 = arith.constant 0 : i32
    return %c0_i32, %c0_i32_0 : i32, i32
  }
  func.func @transform_3(%arg0: i32) -> (i32, i32) {
    %c0_i32 = arith.constant 0 : i32
    %c0_i32_0 = arith.constant 0 : i32
    %c0_i32_1 = arith.constant 0 : i32
    return %c0_i32, %c0_i32_0 : i32, i32
  }
  func.func @transform_4(%arg0: i32) -> (i32, i32) {
    %c0_i32 = arith.constant 0 : i32
    %c0_i32_0 = arith.constant 0 : i32
    %c0_i32_1 = arith.constant 0 : i32
    return %c0_i32, %c0_i32_0 : i32, i32
  }
  func.func @transform_5(%arg0: i32) -> (i32, i32) {
    %c0_i32 = arith.constant 0 : i32
    %c0_i32_0 = arith.constant 0 : i32
    %c0_i32_1 = arith.constant 0 : i32
    return %c0_i32, %c0_i32_0 : i32, i32
  }
  func.func @transform_6(%arg0: i32) -> (i32, i32, i32) {
    %c0_i32 = arith.constant 0 : i32
    %c0_i32_0 = arith.constant 0 : i32
    %c0_i32_1 = arith.constant 0 : i32
    return %arg0, %c0_i32, %c0_i32_0 : i32, i32, i32
  }
}

</mosaic_0001>

<bundles_post_ra>
// kernel: tpu_custom_call.1
= control target key start
LH: loop header
LB: loop body
LE: loop exit
PB: predicated region body
PF: predicated region fallthrough
CT: control target
= control target key end

     0   :  { %11 = vsyncpa [#allocation3], 0  ;;  %s2220_s0 = inlined_call_operand.hbm [shape: f32[2,8,32], index: 0, kind: input, shape index: {}]   ;;  %s2221_s1 = inlined_call_operand.hbm [shape: f32[32,96], index: 1, kind: input, shape index: {}]   ;;  %s2222_s2 = inlined_call_operand.vmem [shape: f32[1,96], index: 2, kind: input, shape index: {}]   ;;  %s2223_s3 = inlined_call_operand.hbm [shape: f32[32,32], index: 3, kind: input, shape index: {}]   ;;  %s2224_s4 = inlined_call_operand.vmem [shape: f32[1,32], index: 4, kind: input, shape index: {}]   ;;  %s2225_s5 = inlined_call_operand.hbm [shape: f32[32,32], index: 5, kind: input, shape index: {}]   ;;  %s2226_s6 = inlined_call_operand.hbm [shape: f32[2,8,32], index: 6, kind: output, shape index: {}]  }
   0x1   :  { %13 = vsyncpa [#allocation3 + $0x1], 0 }
   0x2   :  { %14 = vsyncpa [#allocation6], 0 }
   0x3   :  { %15 = vsyncpa [#allocation9], 0 }
   0x4   :  { %16 = vsyncpa [#allocation4], 0 }
   0x5   :  { %18 = vsyncpa [#allocation4 + $0x1], 0  ;;  %s1871_s21 = smov 0   ;;  %s1873_s22 = smov 0  }
   0x6   :  { %s1875_s23 = smov 0   ;;  %s1877_s24 = smov 0  }
   0x7 LB: > { %s1892_s25 = sadd.s32 4294967295, %s1810_s24   ;;  %s1353_s26 = sadd.s32 4294967294, %s1810_s24   ;;  %s1810_s24 = sphi %s1877_s24, %s2249_s24   ;;  %s1806_s23 = sphi %s1875_s23, %s2248_s23   ;;  %s1802_s22 = sphi %s1873_s22, %s2247_s22   ;;  %s1798_s21 = sphi %s1871_s21, %s2246_s21  }
   0x8   : > { %p44_p0 = scmp.ne.s32.totalorder %s1802_s22, %s1798_s21  ;;  %p2227_p1 = scmp.eq.s32.totalorder %s1892_s25, 0 }
   0x9   : > { %p179_p3 = scmp.eq.s32.totalorder %s1353_s26, 1  ;;  %p1354_p5 = scmp.ge.s32.totalorder %s1810_s24, 1 }
   0xa   : > { %p1901_p4 = por %p2227_p1, %p44_p0  ;;  %p186_p7 = scmp.lt.s32.totalorder %s1810_s24, 3 }
   0xb   : > { %p1906_p6 = por %p179_p3, %p44_p0  ;;  %s1812_s30 = smov [#allocation5]  }
   0xc   : > { %s2230_s27 = scalar_select %p1901_p4, 1, 0 }
   0xd   : > { %s2231_s28 = scalar_select %p1906_p6, 1, 0 }
   0xe   : > { %p1911_p8 = pnand %p1354_p5, %p186_p7  ;;  %s198_s7 = sshll.u32 %s1812_s30, 4  ;;  %s1915_s7 = int_to_ptr.vmem [resolvable:$true] %s198_s7 }
   0xf   : > { %s1813_s9 = smov [#allocation7]   ;;  %s1814_s11 = smov [#allocation8]  }
  0x10   : > { %s2232_s29 = scalar_select %p1911_p8, 1, 0 }
  0x11   : > { %p1526_p9 = pneg %p1911_p8  ;;  %s214_s10 = sshll.u32 %s1813_s9, 4  ;;  %s1926_s10 = int_to_ptr.vmem [resolvable:$true] %s214_s10 }
  0x12   : > { %s1928_s12 = sshll.u32 %s1814_s11, 4  ;;  %s1622_s15 = scalar_lea.hbm %s2221_s1, 512  ;;  %s231_s12 = int_to_ptr.vmem [resolvable:$true] %s1928_s12 }
  0x13   : > { %p1922_p11 = pnand %p1526_p9, %p2227_p1  ;;  %p1623_p12 = scmp.ne.s32.totalorder %s2221_s1, %s1622_s15 }
  0x14   : > { %p1629_p5 = scmp.lt.u32.totalorder %s1622_s15, %s2221_s1 }
  0x15   : > { %p1938_p13 = pneg %p1922_p11 }
  0x17   : > { %p1625_p0 = pnand %p1938_p13, %p1623_p12 }
  0x19   : > { %p1626_p3 = pneg %p1625_p0 }
  0x1b   : > { %p1631_p7 = pnand %p1629_p5, %p1626_p3 }
  0x1d   : > { %1634 = shalt.err (!%p1631_p7)
}
  0x1e   : > { %s1635_s26 = scalar_lea.vmem %s1915_s7, 512  ;;  %p1643_p2 = scmp.lt.s32.totalorder %s1915_s7, %s1915_s7 }
  0x1f   : > { %p1636_p9 = scmp.ne.s32.totalorder %s1915_s7, %s1635_s26  ;;  %p1644_p6 = scmp.lt.s32.totalorder %s1635_s26, %s1635_s26 }
  0x21   : > { %p1638_p10 = pnand %p1636_p9, %p1938_p13  ;;  %p1645_p12 = por %p1644_p6, %p1643_p2 }
  0x23   : > { %p1639_p1 = pneg %p1638_p10 }
  0x25   : > { %p1646_p0 = pnand %p1645_p12, %p1639_p1 }
  0x27   : > { %1649 = shalt.err (!%p1646_p0)
}
  0x28   : > { %s1815_s30 = smov 128   ;;  %s1816_s9 = smov 8  }
  0x29   : > { %1529 = dma.hbm_to_vmem [thread:$0]  (!%p1922_p11), %s2221_s1, 512, %s1915_s7, [#allocation6], %s1815_s30, %s1815_s30, %s1816_s9  }
  0x2a   : > { %s1650_s16 = scalar_lea.hbm %s2223_s3, 512 }
  0x2b   : > { %p1651_p1 = scmp.ne.s32.totalorder %s2223_s3, %s1650_s16  ;;  %p1657_p10 = scmp.lt.u32.totalorder %s1650_s16, %s2223_s3 }
  0x2d   : > { %p1653_p2 = pnand %p1651_p1, %p1938_p13 }
  0x2f   : > { %p1654_p6 = pneg %p1653_p2 }
  0x31   : > { %p1659_p3 = pnand %p1657_p10, %p1654_p6 }
  0x33   : > { %1662 = shalt.err (!%p1659_p3)
}
  0x34   : > { %s1663_s7 = scalar_lea.vmem %s1926_s10, 512  ;;  %p1671_p12 = scmp.lt.s32.totalorder %s1926_s10, %s1926_s10 }
  0x35   : > { %p1664_p5 = scmp.ne.s32.totalorder %s1926_s10, %s1663_s7  ;;  %p1672_p0 = scmp.lt.s32.totalorder %s1663_s7, %s1663_s7 }
  0x37   : > { %p1666_p7 = pnand %p1664_p5, %p1938_p13  ;;  %p1673_p1 = por %p1672_p0, %p1671_p12 }
  0x39   : > { %p1667_p9 = pneg %p1666_p7 }
  0x3b   : > { %p1674_p2 = pnand %p1673_p1, %p1667_p9 }
  0x3d   : > { %1677 = shalt.err (!%p1674_p2)
}
  0x3e   : > { %1532 = dma.hbm_to_vmem [thread:$0]  (!%p1922_p11), %s2223_s3, 512, %s1926_s10, [#allocation6], %s1815_s30, %s1815_s30, %s1816_s9  }
  0x3f   : > { %s1678_s16 = scalar_lea.hbm %s2225_s5, 512 }
  0x40   : > { %p1679_p6 = scmp.ne.s32.totalorder %s2225_s5, %s1678_s16  ;;  %p1685_p5 = scmp.lt.u32.totalorder %s1678_s16, %s2225_s5 }
  0x42   : > { %p1681_p10 = pnand %p1679_p6, %p1938_p13 }
  0x44   : > { %p1682_p3 = pneg %p1681_p10 }
  0x46   : > { %p1687_p7 = pnand %p1685_p5, %p1682_p3 }
  0x48   : > { %1690 = shalt.err (!%p1687_p7)
}
  0x49   : > { %s1691_s7 = scalar_lea.vmem %s231_s12, 512  ;;  %p1699_p1 = scmp.lt.s32.totalorder %s231_s12, %s231_s12 }
  0x4a   : > { %p1692_p9 = scmp.ne.s32.totalorder %s231_s12, %s1691_s7  ;;  %p1700_p2 = scmp.lt.s32.totalorder %s1691_s7, %s1691_s7 }
  0x4c   : > { %p1694_p12 = pnand %p1692_p9, %p1938_p13  ;;  %p1701_p4 = por %p1700_p2, %p1699_p1 }
  0x4e   : > { %p1695_p0 = pneg %p1694_p12 }
  0x50   : > { %p1702_p8 = pnand %p1701_p4, %p1695_p0 }
  0x52   : > { %1705 = shalt.err (!%p1702_p8)
}
  0x53   : > { %1535 = dma.hbm_to_vmem [thread:$0]  (!%p1922_p11), %s2225_s5, 512, %s231_s12, [#allocation9], %s1815_s30, %s1815_s30, %s1816_s9  }
  0x54   : > { %s2011_s18 = sadd.s32 1, %s1810_s24   ;;  %s31_s13 = sadd.s32 1, %s1806_s23 }
  0x55   : > { %s28_s8 = ssub.s32 %s1810_s24, %s2011_s18  ;;  %p38_p8 = scmp.ne.s32.totalorder %s1806_s23, %s1802_s22 }
  0x56   : > { %p29_p4 = scmp.eq.s32.totalorder %s28_s8, 0  ;;  %p39_p13 = scmp.eq.s32.totalorder %s1810_s24, 0 }
  0x57   : > { %p1547_p6 = scmp.lt.s32.totalorder %s1810_s24, 2  ;;  %p2235_p3 = scmp.eq.s32.totalorder %s1892_s25, 1 }
  0x58   : > { %s2021_s14 = scalar_select %p29_p4, %s1806_s23, %s31_s13  }
  0x59   : > { %p40_p10 = por %p39_p13, %p38_p8  ;;  %p2025_p5 = por %p2235_p3, %p38_p8 }
  0x5a   : > { %s244_s16 = sand.u32 1, %s1806_s23   ;;  %s1360_s17 = sshll.u32 %s1810_s24, 7 }
  0x5b   : > { %s1359_s12 = sshll.u32 %s244_s16, 3  ;;  %s2034_s19 = scalar_lea.hbm %s2220_s0, %s1360_s17 }
  0x5c   : > { %s248_s20 = scalar_lea.vmem [#allocation2], %s1359_s12  ;;  %p2036_p11 = pnand %p1547_p6, %p40_p10 }
  0x5d   : > { %s255_s26 = sshll.u32 %s248_s20, 4  ;;  %s245_s10 = scalar_lea.sflag [#allocation3], %s244_s16  ;;  %s2040_s26 = int_to_ptr.vmem [resolvable:$true] %s255_s26 }
  0x5e   : > { %s1706_s11 = scalar_lea.hbm %s2034_s19, 128  ;;  %p1708_p9 = pneg %p2036_p11 }
  0x5f   : > { %p1707_p7 = scmp.ne.s32.totalorder %s2034_s19, %s1706_s11  ;;  %s1711_s17 = scalar_lea.hbm %s2220_s0, 256 }
  0x60   : > { %p1712_p1 = scmp.lt.u32.totalorder %s2034_s19, %s2220_s0  ;;  %p1713_p2 = scmp.lt.u32.totalorder %s1711_s17, %s1706_s11 }
  0x61   : > { %p1709_p12 = pnand %p1708_p9, %p1707_p7  ;;  %p1715_p8 = scmp.lt.u32.totalorder %s1706_s11, %s2034_s19 }
  0x62   : > { %p1714_p4 = por %p1713_p2, %p1712_p1 }
  0x63   : > { %p1710_p0 = pneg %p1709_p12 }
  0x64   : > { %p1716_p13 = por %p1715_p8, %p1714_p4 }
  0x66   : > { %p1717_p6 = pnand %p1716_p13, %p1710_p0 }
  0x68   : > { %1720 = shalt.err (!%p1717_p6)
}
  0x69   : > { %s1721_s16 = scalar_lea.vmem %s2040_s26, 128  ;;  %s1817_s9 = smov [#allocation2]  }
  0x6a   : > { %p1722_p10 = scmp.ne.s32.totalorder %s2040_s26, %s1721_s16  ;;  %s1726_s20 = sshll.u32 %s1817_s9, 4  ;;  %s1727_s20 = int_to_ptr.vmem [resolvable:$false] %s1726_s20 }
  0x6b   : > { %s1728_s8 = scalar_lea.vmem %s1727_s20, 256  ;;  %p1729_p12 = scmp.lt.s32.totalorder %s2040_s26, %s1727_s20 }
  0x6c   : > { %p1724_p3 = pnand %p1722_p10, %p1708_p9  ;;  %p1730_p1 = scmp.lt.s32.totalorder %s1728_s8, %s1721_s16 }
  0x6e   : > { %p1725_p7 = pneg %p1724_p3  ;;  %p1731_p2 = por %p1730_p1, %p1729_p12 }
  0x70   : > { %p1732_p4 = pnand %p1731_p2, %p1725_p7 }
  0x72   : > { %1735 = shalt.err (!%p1732_p4)
}
  0x73   : > { %1539 = dma.hbm_to_vmem [thread:$0]  (!%p2036_p11), %s2034_s19, 128, %s2040_s26, %s245_s10  }
  0x74   : > { %p2238_p0 = scmp.ne.s32.totalorder %s2232_s29, 0 }
  0x75   : > { %s2070_s11 = sand.u32 (!%p2238_p0), 1, %s1802_s22   ;;  %p2239_p9 = scmp.ne.s32.totalorder (!%p2238_p0), %s2230_s27, 0 }
  0x76   : > { %264 = sbr.rel (%p2238_p0) target bundleno = 1831 (0x727), region = 44  ;;  %s1362_s13 = sshll.u32 (!%p2238_p0), %s2070_s11, 3 }
  0x77   : > { %s267_s17 = scalar_lea.sflag (!%p2238_p0), [#allocation3], %s2070_s11  ;;  %s270_s12 = scalar_lea.vmem (!%p2238_p0), [#allocation2], %s1362_s13 }
  0x7d   : > { %1781 = dma.done.wait (%p2239_p9), %s267_s17, 128  }
  0x7e   : > { %1783 = vsyncadd (%p2239_p9), %s267_s17, 4294967168  ;;  %p2240_p11 = scmp.eq.s32.totalorder %s1892_s25, 0 }
  0x80   : > { %1785 = dma.done.wait (%p2240_p11), [#allocation6], 1024   ;;  %p2241_p8 = pmov %p2240_p11 }
  0x82   : > { %1787 = vsyncadd (%p2241_p8), [#allocation6], 4294966272  ;;  %p2242_p13 = pmov %p2241_p8 }
  0x83   : > { %p2243_p6 = pmov %p2241_p8 }
  0x84   : > { %1789 = dma.done.wait (%p2242_p13), [#allocation9], 512  }
  0x85   : > { %1791 = vsyncadd (%p2243_p6), [#allocation9], 4294966784  ;;  %v1818_v0 = vmov 0.0|0.0   ;;  %vm1819_vm0 = vmmov 0   ;;  %v1820_v1 = vmov 0.0   ;;  %v312_v2 = vld [vmem:[#allocation5] sm:$0xff] }
  0x86   : > { %1492 = vmatprep.subr.bf16.mxu0 %v1818_v0  ;;  %1427 = vmatprep.mubr.msk.f32.mxu0 %vm1819_vm0, %v1820_v1  ;;  %v313_v3 = vld [vmem:[#allocation5 + $0x8] sm:$0xff]  ;;  %v314_v4 = vld [vmem:[#allocation5 + $0x10] sm:$0xff]  ;;  %v315_v6 = vld [vmem:[#allocation5 + $0x18] sm:$0xff]  ;;  %vm323_vm1 = vcmask 261120   ;;  %s1821_s19 = smov 96   ;;  %s1822_s26 = smov 120  }
  0x87   : > { %1430 = vmatprep.subr.mxu1 %v1820_v1  ;;  %1432 = vmatprep.mubr.msk.f32.mxu1 %vm1819_vm0, %v1820_v1  ;;  %v1493_v5 = vpack.c.bf16 %v313_v3, %v312_v2  ;;  %v1496_v7 = vpack.c.bf16 %v315_v6, %v314_v4  ;;  %v2095_v8 = vld [vmem:[%s270_s12] sm:$0xff]  ;;  %s1823_s7 = smov 88   ;;  %s1824_s10 = smov 80   ;;  %vm401_vm2 = vcmask 64512   ;;  %vm1072_vm3 = vcmask 130048  }
  0x88   : > { %v1367_v9 = vld [vmem:[%s2222_s2] ss:$0 sm:$0xff]  ;;  %s1825_s30 = smov 112   ;;  %s1826_s16 = smov 72   ;;  %vm1074_vm4 = vcmask 195584  }
  0x89   : > { %1494 = vmatpush3.bf16.msra.mxu0 %v1493_v5  ;;  %s1827_s9 = smov 104   ;;  %s1828_s20 = smov 56  }
  0x8a   : > { %1495 = vmatprep.subr.bf16.mxu0 %v1818_v0  ;;  %s1829_s8 = smov 64   ;;  %s1830_s17 = smov 48  }
  0x8b   : > { %s1831_s12 = smov 40   ;;  %s1832_s27 = smov 8  }
  0x8c   : > { %s1833_s29 = smov 16  }
  0x8d   : > { %1497 = vmatpush3.bf16.msra.mxu0 %v1496_v7  ;;  %v1076_v7 = vld [vmem:[#allocation7] sm:$0xff] }
  0x8e   : > { %1440 = vmatprep.subr.mxu0 %v1820_v1 }
  0x90   : > { %1428 = vmatmul.mubr.msk.f32.vlgmr.msra.gmra.mrb[0].mxu0 %vm323_vm1, %v2095_v8 }
  0x91   : > { %1442 = vmatprep.mubr.msk.f32.mxu0 %vm1819_vm0, %v1820_v1 }
 0x163   : > { %v393_v10 = vpop.f32.mrb[0].mxu0 }
 0x164   : > { %v2105_v11 = vadd.f32 %v1367_v9, %v393_v10  ;;  %v1429_v12 = vpop.f32.mrb[1].mxu0  ;;  %v1077_v9 = vld [vmem:[#allocation7 + $0x8] sm:$0xff] }
 0x165   : > { %v1499_v10 = vpack.c.bf16 %v1077_v9, %v1076_v7 }
 0x166   : > { %399 = vrot.lane.b32.xlu0 %v2105_v11, %s1821_s19  ;;  %v397_v13 = vmul.f32 0.35355338, %v2105_v11  ;;  %s1834_s19 = smov 24  }
 0x168   : > { %564 = vrot.lane.b32.xlu1 %v397_v13, %s1822_s26 }
 0x16a   : > { %566 = vrot.lane.b32.xlu0 %v2105_v11, %s1823_s7 }
 0x16c   : > { %731 = vrot.lane.b32.xlu1 %v2105_v11, %s1824_s10  ;;  %s1385_s10 = sshll.u32 %s1892_s25, 7 }
 0x16e   : > { %729 = vrot.lane.b32.xlu0 %v397_v13, %s1825_s30  ;;  %s310_s30 = scalar_lea.vmem [#allocation10], %s1362_s13  ;;  %s1835_s13 = smov [#allocation10]  }
 0x170   : > { %896 = vrot.lane.b32.xlu1 %v2105_v11, %s1826_s16  ;;  %s1254_s16 = sshll.u32 %s310_s30, 4  ;;  %s2177_s16 = int_to_ptr.vmem [resolvable:$true] %s1254_s16 }
 0x171   : > { %s1736_s25 = scalar_lea.vmem %s2177_s16, 128 }
 0x172   : > { %894 = vrot.lane.b32.xlu0 %v397_v13, %s1827_s9  ;;  %p1737_p10 = scmp.ne.s32.totalorder %s2177_s16, %s1736_s25 }
 0x174   : > { %p1738_p3 = pnand %p1737_p10, %p2025_p5 }
 0x176   : > { %p1739_p7 = pneg %p1738_p3 }
 0x1d8   : > { %v400_v14 = vpop.permute.xlu0 %399 }
 0x1d9   : > { %1431 = vmatpush3.xpose.msk.msra.mxu1 %vm401_vm2, %v400_v14 }
 0x1da   : > { %v565_v15 = vpop.permute.xlu1 %564  ;;  %1435 = vmatprep.subr.mxu1 %v1820_v1 }
 0x1dc   : > { %v567_v16 = vpop.permute.xlu0 %566  ;;  %1433 = vmatmul.mubr.msk.f32.vlgmr.msra.gmra.mrb[0].mxu1 %vm401_vm2, %v397_v13 }
 0x1dd   : > { %1441 = vmatpush3.xpose.msk.msra.mxu0 %vm401_vm2, %v567_v16  ;;  %1437 = vmatprep.mubr.msk.f32.mxu1 %vm1819_vm0, %v1820_v1  ;;  %v1079_v16 = vld [vmem:[#allocation7 + $0x18] sm:$0xff] }
 0x1de   : > { %v732_v17 = vpop.permute.xlu1 %731  ;;  %1450 = vmatprep.subr.mxu0 %v1820_v1 }
 0x1e0   : > { %1443 = vmatmul.mubr.msk.f32.vlgmr.msra.gmra.mrb[2].mxu0 %vm401_vm2, %v565_v15  ;;  %v730_v18 = vpop.permute.xlu0 %729  ;;  %v1078_v15 = vld [vmem:[#allocation7 + $0x10] sm:$0xff] }
 0x1e1   : > { %1451 = vmatpush3.xpose.msk.msra.mxu0 %vm401_vm2, %v732_v17  ;;  %1452 = vmatprep.mubr.msk.f32.mxu0 %vm1819_vm0, %v1820_v1  ;;  %v1502_v17 = vpack.c.bf16 %v1079_v16, %v1078_v15 }
 0x1e2   : > { %1460 = vmatprep.subr.mxu0 %v1820_v1  ;;  %v897_v19 = vpop.permute.xlu1 %896 }
 0x1e4   : > { %1453 = vmatmul.mubr.msk.f32.vlgmr.msra.gmra.mrb[4].mxu0 %vm401_vm2, %v730_v18  ;;  %v895_v20 = vpop.permute.xlu0 %894  ;;  %v1161_v18 = vld [vmem:[#allocation8] sm:$0xff] }
 0x1e5   : > { %1461 = vmatpush3.xpose.msk.msra.mxu0 %vm401_vm2, %v897_v19  ;;  %1462 = vmatprep.mubr.msk.f32.mxu0 %vm1819_vm0, %v1820_v1  ;;  %v1162_v19 = vld [vmem:[#allocation8 + $0x8] sm:$0xff] }
 0x1e6   : > { %1498 = vmatprep.subr.bf16.mxu0 %v1818_v0 }
 0x1e8   : > { %1463 = vmatmul.mubr.msk.f32.vlgmr.msra.gmra.mrb[6].mxu0 %vm401_vm2, %v895_v20  ;;  %v1505_v20 = vpack.c.bf16 %v1162_v19, %v1161_v18 }
 0x1e9   : > { %1478 = vmatprep.mubr.msk.f32.mxu0 %vm1819_vm0, %v1820_v1  ;;  %1500 = vmatpush3.bf16.msra.mxu0 %v1499_v10 }
 0x1ea   : > { %1501 = vmatprep.subr.bf16.mxu0 %v1818_v0 }
 0x1ed   : > { %1503 = vmatpush3.bf16.msra.mxu0 %v1502_v17 }
 0x2af   : > { %v473_v21 = vpop.f32.mrb[0].mxu1 }
 0x2b0   : > { %v1434_v22 = vpop.f32.mrb[1].mxu1  ;;  %v477_v23 = vsel %vm401_vm2, %v473_v21, -inf }
 0x2b1   : > { %478 = vmax.xlane.f32.xlu1 %v477_v23 }
 0x2b3   : > { %v638_v24 = vpop.f32.mrb[2].mxu0 }
 0x2b4   : > { %v1444_v25 = vpop.f32.mrb[3].mxu0  ;;  %v642_v26 = vsel %vm401_vm2, %v638_v24, -inf }
 0x2b5   : > { %643 = vmax.xlane.f32.xlu0 %v642_v26 }
 0x2b7   : > { %v803_v27 = vpop.f32.mrb[4].mxu0 }
 0x2b8   : > { %v1454_v28 = vpop.f32.mrb[5].mxu0  ;;  %v807_v29 = vsel %vm401_vm2, %v803_v27, -inf }
 0x2b9   : > { %808 = vmax.xlane.f32.xlu0 %v807_v29 }
 0x2bb   : > { %v968_v30 = vpop.f32.mrb[6].mxu0 }
 0x2bc   : > { %v1464_v31 = vpop.f32.mrb[7].mxu0  ;;  %v972_v32 = vsel %vm401_vm2, %v968_v30, -inf }
 0x2bd   : > { %973 = vmax.xlane.f32.xlu1 %v972_v32  ;;  %v1381_v32 = vld [vmem:[%s2224_s4] ss:$0 sm:$0xff] }
 0x2ce   : > { %653 = vrot.lane.b32.xlu1 %v2105_v11, %s1828_s20 }
 0x33e   : > { %v479_v33 = vpop.xlane.xlu1 %478 }
 0x33f   : > { %v480_v34 = vsub.f32 %v473_v21, %v479_v33 }
 0x341   : > { %v481_v35 = vmul.f32 1.442695, %v480_v34 }
 0x342   : > { %v644_v36 = vpop.xlane.xlu0 %643 }
 0x343   : > { %1606 = vpow2.f32 %v481_v35  ;;  %v645_v37 = vsub.f32 %v638_v24, %v644_v36 }
 0x345   : > { %v646_v38 = vmul.f32 1.442695, %v645_v37 }
 0x346   : > { %v809_v48 = vpop.xlane.xlu0 %808 }
 0x347   : > { %1608 = vpow2.f32 %v646_v38  ;;  %v810_v49 = vsub.f32 %v803_v27, %v809_v48 }
 0x349   : > { %v811_v50 = vmul.f32 1.442695, %v810_v49 }
 0x34a   : > { %v974_v39 = vpop.xlane.xlu1 %973 }
 0x34b   : > { %v975_v40 = vsub.f32 %v968_v30, %v974_v39  ;;  %v1164_v30 = vld [vmem:[#allocation8 + $0x18] sm:$0xff] }
 0x34d   : > { %v1607_v41 = vpop.eup %1606  ;;  %v976_v42 = vmul.f32 1.442695, %v975_v40 }
 0x34e   : > { %v483_v43 = vsel %vm401_vm2, %v1607_v41, 0.0  ;;  %v654_v53 = vpop.permute.xlu1 %653 }
 0x34f   : > { %1610 = vpow2.f32 %v976_v42  ;;  %484 = vadd.xlane.f32.xlu0 %v483_v43 }
 0x350   : > { %1612 = vpow2.f32 %v811_v50 }
 0x351   : > { %v1609_v44 = vpop.eup %1608 }
 0x352   : > { %v648_v45 = vsel %vm401_vm2, %v1609_v44, 0.0 }
 0x353   : > { %649 = vadd.xlane.f32.xlu1 %v648_v45 }
 0x359   : > { %v1611_v46 = vpop.eup %1610 }
 0x35a   : > { %v978_v47 = vsel %vm401_vm2, %v1611_v46, 0.0  ;;  %v1613_v51 = vpop.eup %1612 }
 0x35b   : > { %979 = vadd.xlane.f32.xlu1 %v978_v47  ;;  %v813_v52 = vsel %vm401_vm2, %v1613_v51, 0.0 }
 0x365   : > { %488 = vrot.lane.b32.xlu0 %v2105_v11, %s1829_s8  ;;  %s2175_s8 = scalar_lea.hbm %s2226_s6, %s1385_s10 }
 0x36c   : > { %818 = vrot.lane.b32.xlu1 %v2105_v11, %s1830_s17  ;;  %s1241_s17 = scalar_lea.sflag [#allocation4], %s2070_s11 }
 0x384   : > { %814 = vadd.xlane.f32.xlu0 %v813_v52 }
 0x39a   : > { %983 = vrot.lane.b32.xlu0 %v2105_v11, %s1831_s12  ;;  %s1740_s12 = sshll.u32 %s1835_s13, 4  ;;  %s1741_s12 = int_to_ptr.vmem [resolvable:$false] %s1740_s12 }
 0x39b   : > { %p1743_p12 = scmp.lt.s32.totalorder %s2177_s16, %s1741_s12 }
 0x3dc   : > { %v485_v54 = vpop.xlane.xlu0 %484 }
 0x3dd   : > { %1614 = vrcp.f32 %v485_v54 }
 0x3e0   : > { %v489_v55 = vpop.permute.xlu0 %488  ;;  %v650_v56 = vpop.xlane.xlu1 %649 }
 0x3e1   : > { %1616 = vrcp.f32 %v650_v56  ;;  %1436 = vmatpush3.msra.mxu1 %v489_v55 }
 0x3e2   : > { %1445 = vmatprep.subr.mxu1 %v1820_v1 }
 0x3e7   : > { %v1615_v57 = vpop.eup %1614 }
 0x3e8   : > { %v487_v58 = vmul.f32 %v1615_v57, %v1607_v41  ;;  %v980_v59 = vpop.xlane.xlu1 %979 }
 0x3ea   : > { %1438 = vmatmul.mubr.msk.f32.vlgmr.msra.gmra.mrb[2].mxu1 %vm401_vm2, %v487_v58 }
 0x3eb   : > { %v1617_v60 = vpop.eup %1616  ;;  %1446 = vmatpush3.msra.mxu1 %v654_v53  ;;  %1447 = vmatprep.mubr.msk.f32.mxu1 %vm1819_vm0, %v1820_v1 }
 0x3ec   : > { %v652_v61 = vmul.f32 %v1617_v60, %v1609_v44  ;;  %v819_v62 = vpop.permute.xlu1 %818  ;;  %1455 = vmatprep.subr.mxu1 %v1820_v1 }
 0x3ee   : > { %1448 = vmatmul.mubr.msk.f32.vlgmr.msra.gmra.mrb[4].mxu1 %vm401_vm2, %v652_v61 }
 0x3ef   : > { %1456 = vmatpush3.msra.mxu1 %v819_v62  ;;  %1457 = vmatprep.mubr.msk.f32.mxu1 %vm1819_vm0, %v1820_v1 }
 0x3f0   : > { %1465 = vmatprep.subr.mxu1 %v1820_v1 }
 0x411   : > { %v815_v63 = vpop.xlane.xlu0 %814 }
 0x412   : > { %1618 = vrcp.f32 %v815_v63 }
 0x413   : > { %1620 = vrcp.f32 %v980_v59 }
 0x415   : > { %v984_v5 = vpop.permute.xlu0 %983 }
 0x41c   : > { %v1619_v2 = vpop.eup %1618 }
 0x41d   : > { %v817_v3 = vmul.f32 %v1619_v2, %v1613_v51  ;;  %v1621_v4 = vpop.eup %1620 }
 0x41e   : > { %v982_v6 = vmul.f32 %v1621_v4, %v1611_v46 }
 0x41f   : > { %1458 = vmatmul.mubr.msk.f32.vlgmr.msra.gmra.mrb[6].mxu1 %vm401_vm2, %v817_v3 }
 0x420   : > { %1466 = vmatpush3.msra.mxu1 %v984_v5  ;;  %1467 = vmatprep.mubr.msk.f32.mxu1 %vm1819_vm0, %v1820_v1 }
 0x421   : > { %1504 = vmatprep.subr.bf16.mxu1 %v1818_v0 }
 0x423   : > { %1468 = vmatmul.mubr.msk.f32.vlgmr.msra.gmra.mrb[8].mxu1 %vm401_vm2, %v982_v6 }
 0x424   : > { %1489 = vmatprep.mubr.msk.f32.mxu1 %vm1819_vm0, %v1820_v1  ;;  %1506 = vmatpush3.bf16.msra.mxu1 %v1505_v20 }
 0x425   : > { %1507 = vmatprep.subr.bf16.mxu1 %v1818_v0  ;;  %v1163_v0 = vld [vmem:[#allocation8 + $0x10] sm:$0xff] }
 0x426   : > { %v1508_v31 = vpack.c.bf16 %v1164_v30, %v1163_v0 }
 0x428   : > { %1509 = vmatpush3.bf16.msra.mxu1 %v1508_v31 }
 0x4bd   : > { %v560_v11 = vpop.f32.mrb[2].mxu1 }
 0x4be   : > { %v1439_v12 = vpop.f32.mrb[3].mxu1 }
 0x4c1   : > { %v725_v13 = vpop.f32.mrb[4].mxu1 }
 0x4c2   : > { %1060 = vrot.lane.b32.xlu1 %v725_v13, %s1832_s27  ;;  %v1449_v14 = vpop.f32.mrb[5].mxu1  ;;  %s1742_s27 = scalar_lea.vmem %s1741_s12, 256 }
 0x4c3   : > { %p1744_p1 = scmp.lt.s32.totalorder %s1742_s27, %s1736_s25 }
 0x4c5   : > { %p1745_p2 = por %p1744_p1, %p1743_p12 }
 0x4c7   : > { %p1746_p4 = pnand %p1745_p2, %p1739_p7 }
 0x4f2   : > { %v890_v1 = vpop.f32.mrb[6].mxu1 }
 0x4f3   : > { %1064 = vrot.lane.b32.xlu0 %v890_v1, %s1833_s29  ;;  %v1459_v21 = vpop.f32.mrb[7].mxu1 }
 0x4f6   : > { %v1055_v22 = vpop.f32.mrb[8].mxu1 }
 0x4f7   : > { %1068 = vrot.lane.b32.xlu1 %v1055_v22, %s1834_s19  ;;  %v1469_v23 = vpop.f32.mrb[9].mxu1 }
 0x534   : > { %v1061_v24 = vpop.permute.xlu1 %1060 }
 0x535   : > { %v1071_v26 = vsel %vm401_vm2, %v560_v11, %v1061_v24 }
 0x565   : > { %v1065_v25 = vpop.permute.xlu0 %1064 }
 0x566   : > { %v1073_v27 = vsel %vm1072_vm3, %v1071_v26, %v1065_v25 }
 0x569   : > { %v1069_v28 = vpop.permute.xlu1 %1068 }
 0x56a   : > { %v1075_v29 = vsel %vm1074_vm4, %v1073_v27, %v1069_v28 }
 0x56b   : > { %1479 = vmatmul.mubr.msk.f32.vlgmr.msra.gmra.mrb[8].mxu0 %vm323_vm1, %v1075_v29 }
 0x63e   : > { %v1156_v33 = vpop.f32.mrb[8].mxu0 }
 0x63f   : > { %v1157_v34 = vadd.f32 %v1381_v32, %v1156_v33  ;;  %v1480_v35 = vpop.f32.mrb[9].mxu0 }
 0x641   : > { %v1160_v36 = vadd.f32 %v1157_v34, %v2095_v8 }
 0x643   : > { %1490 = vmatmul.mubr.msk.f32.vlgmr.msra.gmra.mrb[10].mxu1 %vm323_vm1, %v1160_v36 }
 0x716   : > { %v1234_v37 = vpop.f32.mrb[10].mxu1 }
 0x717   : > { %v1238_v38 = vadd.f32 %v1234_v37, %v1160_v36  ;;  %v1491_v39 = vpop.f32.mrb[11].mxu1 }
 0x719   : > { %1239 = vst.msk [vmem:[%s310_s30] sm:$0xff] %vm323_vm1, %v1238_v38 }
 0x71a   : > { %1749 = shalt.err (!%p1746_p4)
}
 0x71b   : > { %s1750_s11 = scalar_lea.hbm %s2175_s8, 128  ;;  %s1754_s26 = scalar_lea.hbm %s2226_s6, 256 }
 0x71c   : > { %p1751_p0 = scmp.ne.s32.totalorder %s2175_s8, %s1750_s11  ;;  %p1755_p8 = scmp.lt.u32.totalorder %s2175_s8, %s2226_s6 }
 0x71d   : > { %p1756_p13 = scmp.lt.u32.totalorder %s1754_s26, %s1750_s11  ;;  %p1758_p10 = scmp.lt.u32.totalorder %s1750_s11, %s2175_s8 }
 0x71e   : > { %p1752_p9 = pnand %p1751_p0, %p2025_p5 }
 0x71f   : > { %p1757_p6 = por %p1756_p13, %p1755_p8 }
 0x720   : > { %p1753_p11 = pneg %p1752_p9 }
 0x721   : > { %p1759_p3 = por %p1758_p10, %p1757_p6 }
 0x723   : > { %p1760_p7 = pnand %p1759_p3, %p1753_p11 }
 0x725   : > { %1763 = shalt.err (!%p1760_p7)
}
 0x726   : > { %1524 = dma.vmem_to_hbm [thread:$0]  (%p2025_p5), %s2177_s16, 128, %s2175_s8, %s1241_s17  }
 0x727 PF: > { %s1266_s30 = sand.u32 1, %s1798_s21   ;;  %p2244_p12 = scmp.ne.s32.totalorder %s2231_s28, 0 }
 0x728   : > { %p2245_p1 = scmp.ge.s32.totalorder %s1810_s24, 2  ;;  %s1267_s9 = scalar_lea.sflag [#allocation4], %s1266_s30 }
 0x72a   : > { %p1541_p2 = pnand %p2245_p1, %p2244_p12 }
 0x72c   : > { %1793 = dma.done.wait (!%p1541_p2), %s1267_s9, 128  }
 0x72d   : > { %1795 = vsyncadd (!%p1541_p2), %s1267_s9, 4294967168  ;;  %p21_p4 = scmp.ge.s32.totalorder %s2011_s18, 4   ;;  %s2246_s21 = smov %s1802_s22 }
 0x72e   : > { %s2247_s22 = smov %s1806_s23  ;;  %s2248_s23 = smov %s2021_s14 }
 0x72f   : > { %s2249_s24 = smov %s2011_s18  ;;  %23 = sbr.rel (!%p21_p4) target bundleno = 7 (0x7), region = 101 }
 0x736   :  { %1272 = vsyncpa [#allocation3], 1 }
 0x737   :  { %1274 = vsyncpa [#allocation3 + $0x1], 1 }
 0x738   :  { %1275 = vsyncpa [#allocation6], 1 }
 0x739   :  { %1276 = vsyncpa [#allocation9], 1 }
 0x73a   :  { %1277 = vsyncpa [#allocation4], 1 }
 0x73b   :  { %1279 = vsyncpa [#allocation4 + $0x1], 1 }

</bundles_post_ra>
